<compile_context>
chip_gen: v7x
topology: tpu7x:2x2x1
jax: 0.10.0
libtpu: 0.0.40
codegen_flags: <defaults>
</compile_context>

<pallas_src>
import functools

import jax
import jax.numpy as jnp
from jax.experimental import pallas as pl
from jax.experimental.pallas import tpu as pltpu

_LANES = 128                     # vreg lane width: last dim of every tile
_MAX_TILE_ROWS = 8192            # (8192, 128) f32 = 4 MiB/tile; 16 MiB double-buffered in+out
_VMEM_LIMIT_BYTES = 32 << 20     # raise v5e's 16 MiB scoped default; well under v7x's 64 MiB physical
_XLA_FALLBACK_ELEMS = 64 * 1024  # below this, a fused XLA elementwise op beats kernel dispatch


def _linear1d_kernel(w_ref, b_ref, x_ref, o_ref):
    # w_ref / b_ref are (1, 1) scalars in SMEM; x_ref / o_ref are (tile_rows, 128) VMEM tiles.
    w = w_ref[0, 0]
    b = b_ref[0, 0]
    # Explicit cast so a non-f32 input dtype downcasts intentionally on the store.
    o_ref[...] = (x_ref[...] * w + b).astype(o_ref.dtype)


def _round_up(v, m):
    return ((v + m - 1) // m) * m


def _sublane_granule(dtype):
    # Packed sublane granule: f32 -> 8, bf16/f16 -> 16, int8/fp8 -> 32.
    return 8 * max(1, 4 // jnp.dtype(dtype).itemsize)


@functools.partial(jax.jit, static_argnames=("max_tile_rows", "xla_fallback_elems"))
def linear1d_forward(x, weight, bias, *,
                     max_tile_rows=_MAX_TILE_ROWS,
                     xla_fallback_elems=_XLA_FALLBACK_ELEMS):
    """Pallas equivalent of OneDimensionalLinearRegression.forward.

    x:      (N, 1)  input samples (rows = samples, last dim = in_features == 1)
    weight: (1, 1)  nn.Linear weight (out_features, in_features)
    bias:   (1,)    nn.Linear bias
    returns (N, 1)
    """
    n, f = x.shape
    assert f == 1, "in_features must be 1"

    w32 = jnp.asarray(weight, jnp.float32).reshape(1, 1)
    b32 = jnp.asarray(bias, jnp.float32).reshape(1, 1)

    # Small-N fast path: dispatch + layout plumbing dominates at tiny sizes; a fused
    # XLA elementwise op is strictly faster there.
    if n < xla_fallback_elems:
        return (x * w32[0, 0] + b32[0, 0]).astype(x.dtype)

    granule = _sublane_granule(x.dtype)
    rows = pl.cdiv(n, _LANES)

    # Balanced tiles: pick tile count first, then round the per-tile rows up to the
    # sublane granule -> tail padding is bounded by < granule rows (no pure-padding step).
    num_tiles = pl.cdiv(rows, max_tile_rows)
    if num_tiles == 1 and rows >= 2 * granule:
        # v7x has 2 TensorCores per chip; give both a block under "parallel".
        num_tiles = 2
    tile_rows = _round_up(pl.cdiv(rows, num_tiles), granule)
    padded_rows = num_tiles * tile_rows
    padded_n = padded_rows * _LANES

    exact_fit = padded_n == n
    x_flat = jnp.ravel(x)
    if exact_fit:
        # Zero-copy: reshape of a contiguous array is a free view, no extra HBM pass.
        x_dense = x_flat.reshape(padded_rows, _LANES)
    else:
        # Ragged N: bounded pad (balanced tiles keep it small); allow_input_fusion lets
        # XLA fuse the pad/reshape producer into the kernel's input operand.
        x_dense = jnp.pad(x_flat, (0, padded_n - n)).reshape(padded_rows, _LANES)

    compiler_params = pltpu.CompilerParams(
        # "parallel" lets v7x shard the tile range across its 2 TensorCores
        # (measured no-op on v5e/v6e, so it is harmless there).
        dimension_semantics=("parallel",),
        vmem_limit_bytes=_VMEM_LIMIT_BYTES,
        allow_input_fusion=None if exact_fit else [False, False, True],
    )

    out_dense = pl.pallas_call(
        _linear1d_kernel,
        out_shape=jax.ShapeDtypeStruct((padded_rows, _LANES), x.dtype),
        grid=(num_tiles,),
        in_specs=[
            pl.BlockSpec(memory_space=pltpu.SMEM),                 # weight scalar
            pl.BlockSpec(memory_space=pltpu.SMEM),                 # bias scalar
            pl.BlockSpec((tile_rows, _LANES), lambda i: (i, 0)),   # x tile (lane-dense)
        ],
        out_specs=pl.BlockSpec((tile_rows, _LANES), lambda i: (i, 0)),
        compiler_params=compiler_params,
        # TODO(synk): if the caller donates x (same dtype, exact-fit layout), add
        # input_output_aliases={2: 0} so the output reuses x's HBM buffer.
    )(w32, b32, x_dense)

    if exact_fit:
        return out_dense.reshape(n, 1)              # free view, no slice copy
    # Padded tail elements evaluate to `b` in-kernel; they are sliced off here.
    return out_dense.reshape(-1)[:n].reshape(n, 1)


if __name__ == "__main__":
    key = jax.random.PRNGKey(0)
    k_w, k_b = jax.random.split(key, 2)

    # Deterministic parameter init mimicking nn.Linear(1, 1): uniform(-1, 1) since fan_in = 1.
    weight = jax.random.uniform(k_w, (1, 1), dtype=jnp.float32, minval=-1.0, maxval=1.0)
    bias = jax.random.uniform(k_b, (1,), dtype=jnp.float32, minval=-1.0, maxval=1.0)

    # Same input layout as the PyTorch spec: 500 samples, single feature (ragged vs 128 lanes).
    N = 500
    x = jnp.linspace(0.0, 10.0, N, dtype=jnp.float32).reshape(-1, 1)
    ref = x @ weight.T + bias

    # Force the Pallas path even at this small N (default would take the XLA fast path).
    out = jax.block_until_ready(linear1d_forward(x, weight, bias, xla_fallback_elems=0))
    assert out.shape == (N, 1)
    assert jnp.allclose(out, ref, atol=1e-6, rtol=1e-6)

    # Lane-aligned input: exercises the zero-copy (no pad / no slice) path and a 2-step grid.
    N2 = 2048
    x2 = jnp.linspace(-5.0, 5.0, N2, dtype=jnp.float32).reshape(-1, 1)
    out2 = jax.block_until_ready(linear1d_forward(x2, weight, bias, xla_fallback_elems=0))
    assert jnp.allclose(out2, x2 @ weight.T + bias, atol=1e-6, rtol=1e-6)

    # Default call (small-N XLA fallback) must agree as well.
    out3 = jax.block_until_ready(linear1d_forward(x, weight, bias))
    assert jnp.allclose(out3, ref, atol=1e-6, rtol=1e-6)

    print("KERNEL_OK")
</pallas_src>

<mosaic_0001>
module attributes {stable_mosaic.version = 11 : i64} {
  func.func @_linear1d_kernel(%arg0: i32, %arg1: memref<1x1xf32, #tpu.memory_space<smem>>, %arg2: memref<1x1xf32, #tpu.memory_space<smem>>, %arg3: memref<8x128xf32, #tpu.memory_space<vmem>>, %arg4: memref<8x128xf32, #tpu.memory_space<vmem>>) attributes {dimension_semantics = [#tpu.dimension_semantics<parallel>], iteration_bounds = array<i64: 1>, scalar_prefetch = 0 : i64, scratch_operands = 0 : i64, tpu.core_type = #tpu.core_type<tc>, window_params = [{transform_indices = @transform_0, window_bounds = array<i64: 1, 1>}, {transform_indices = @transform_1, window_bounds = array<i64: 1, 1>}, {transform_indices = @transform_2, window_bounds = array<i64: 8, 128>}, {transform_indices = @transform_3, window_bounds = array<i64: 8, 128>}]} {
    %c0 = arith.constant 0 : index
    %c0_0 = arith.constant 0 : index
    %0 = memref.load %arg1[%c0, %c0_0] : memref<1x1xf32, #tpu.memory_space<smem>>
    %c0_1 = arith.constant 0 : index
    %c0_2 = arith.constant 0 : index
    %1 = memref.load %arg2[%c0_1, %c0_2] : memref<1x1xf32, #tpu.memory_space<smem>>
    %c0_3 = arith.constant 0 : index
    %c0_4 = arith.constant 0 : index
    %2 = vector.load %arg3[%c0_3, %c0_4] : memref<8x128xf32, #tpu.memory_space<vmem>>, vector<8x128xf32>
    %3 = vector.broadcast %0 : f32 to vector<8x128xf32>
    %4 = arith.mulf %2, %3 : vector<8x128xf32>
    %5 = vector.broadcast %1 : f32 to vector<8x128xf32>
    %6 = arith.addf %4, %5 : vector<8x128xf32>
    %c0_5 = arith.constant 0 : index
    %c0_6 = arith.constant 0 : index
    %7 = vector.load %arg4[%c0_5, %c0_6] : memref<8x128xf32, #tpu.memory_space<vmem>>, vector<8x128xf32>
    tpu.vector_store %arg4[%c0_5, %c0_6], %6 {strides = array<i32>} : memref<8x128xf32, #tpu.memory_space<vmem>>, vector<8x128xf32>,
    return
  }
  func.func @transform_0(%arg0: i32) -> (i32, i32) {
    %c0_i32 = arith.constant 0 : i32
    %c0_i32_0 = arith.constant 0 : i32
    %c0_i32_1 = arith.constant 0 : i32
    return %c0_i32, %c0_i32_0 : i32, i32
  }
  func.func @transform_1(%arg0: i32) -> (i32, i32) {
    %c0_i32 = arith.constant 0 : i32
    %c0_i32_0 = arith.constant 0 : i32
    %c0_i32_1 = arith.constant 0 : i32
    return %c0_i32, %c0_i32_0 : i32, i32
  }
  func.func @transform_2(%arg0: i32) -> (i32, i32) {
    %c0_i32 = arith.constant 0 : i32
    %c0_i32_0 = arith.constant 0 : i32
    return %arg0, %c0_i32 : i32, i32
  }
  func.func @transform_3(%arg0: i32) -> (i32, i32) {
    %c0_i32 = arith.constant 0 : i32
    %c0_i32_0 = arith.constant 0 : i32
    return %arg0, %c0_i32 : i32, i32
  }
}

</mosaic_0001>

<bundles_post_ra>
// kernel: linear1d_forward.2
= control target key start
LH: loop header
LB: loop body
LE: loop exit
PB: predicated region body
PF: predicated region fallthrough
CT: control target
= control target key end

     0   :  { %v19_v2 = vlaneseq  ;;  %s77_s0 = inlined_call_operand.<no memory space> [shape: f32[1,1], index: 0, kind: input, shape index: {}]   ;;  %s78_s1 = inlined_call_operand.<no memory space> [shape: f32[1,1], index: 1, kind: input, shape index: {}]   ;;  %s79_s2 = inlined_call_operand.vmem [shape: f32[500], index: 2, kind: input, shape index: {}]   ;;  %s80_s3 = inlined_call_operand.<no memory space> [shape: f32[], index: 3, kind: input, shape index: {}]   ;;  %s81_s4 = inlined_call_operand.vmem [shape: f32[8,128], index: 4, kind: output, shape index: {}]  }
   0x1   :  { %v11_v0 = vstv %s80_s3  ;;  %v18_v1 = vld [vmem:[%s79_s2] sm:$0xf]  ;;  %v28_v3 = vstv %s77_s0  ;;  %v30_v5 = vstv %s78_s1 }
   0x2   :  { %vm21_vm0 = vcmp.lt.s32.totalorder %v19_v2, 500 }
   0x3   :  { %v22_v4 = vsel %vm21_vm0, %v18_v1, %v11_v0 }
   0x4   :  { %v29_v6 = vmul.f32 %v28_v3, %v22_v4 }
   0x6   :  { %v31_v7 = vadd.f32 %v30_v5, %v29_v6 }
   0x8   :  { %32 = vst [vmem:[%s81_s4] sm:$0xff] %v31_v7 }

</bundles_post_ra>
